<compile_context>
chip_gen: v6e
topology: v6e:2x2x1
jax: 0.10.0
libtpu: 0.0.40
codegen_flags: <defaults>
</compile_context>

<pallas_src>
import jax
import jax.numpy as jnp
from jax.experimental import pallas as pl
from jax.experimental.pallas import tpu as pltpu

JITTER = 0.1


# ------------------------------ Pallas kernels ------------------------------

def stgp_temporal_kernel(coef_ref, train_t_ref, test_t_t_ref, vt_t_ref,
                         pt_ref, pt2_ref):
    """Grid-invariant temporal branch, computed once.

    pt  = (T @ Vt)^T = Vt^T @ T^T   with T[i,j] = exp(c_t * (test_t[i]-train_t[j])^2)
    pt2 = pt * pt
    """
    c_t = coef_ref[2]
    d_t = train_t_ref[...] - test_t_t_ref[...]            # (Nt_p,1)-(1,Mt_p) -> (Nt_p,Mt_p)
    t_k_t = jnp.exp(c_t * (d_t * d_t))                    # T^T  (Nt_p, Mt_p)
    pt = jnp.dot(vt_t_ref[...], t_k_t,
                 preferred_element_type=jnp.float32)      # (Nt_p, Mt_p)
    pt_ref[...] = pt
    pt2_ref[...] = pt * pt


def stgp_spatial_kernel(coef_ref,
                        test_sp_ref, train_sp_t_ref,
                        vs_ref, alpha_t_ref, lam_inv_t_ref,
                        pt_ref, pt2_ref,
                        ypred_ref, yvar_ref):
    """Per-Ms-tile work: fused SE kernel build + three NN matmuls."""
    c_ll = coef_ref[0]       # -0.5 / latlong_ls^2
    c_el = coef_ref[1]       # -0.5 / elev_ls^2
    sig_var = coef_ref[3]    # exp(log_signal_variance)

    test_sp = test_sp_ref[...]          # (TILE_MS, 3)
    train_sp_t = train_sp_t_ref[...]    # (3, Ns_p)

    # Fused squared-exponential: a single exp per (TILE_MS, Ns_p) tile, with
    # chained accumulation of the squared-distance argument (low vreg pressure).
    d_lat = test_sp[:, 0:1] - train_sp_t[0:1, :]
    d_lon = test_sp[:, 1:2] - train_sp_t[1:2, :]
    arg = c_ll * (d_lat * d_lat + d_lon * d_lon)
    d_ele = test_sp[:, 2:3] - train_sp_t[2:3, :]
    arg = arg + c_el * (d_ele * d_ele)
    s_k = jnp.exp(arg)                                    # test_spatial_K tile (TILE_MS, Ns_p)

    q = jnp.dot(s_k, vs_ref[...],
                preferred_element_type=jnp.float32)       # (TILE_MS, Ns_p) = S @ Vs

    # yPred tile, already in the final (Ms, Mt) layout of the PyTorch forward.
    ypred_ref[...] = jnp.dot(
        jnp.dot(q, alpha_t_ref[...], preferred_element_type=jnp.float32),
        pt_ref[...], preferred_element_type=jnp.float32)

    # diag(K_test @ Sigma^{-1} @ K_test^T) factorizes identically with squared factors.
    diag_term = jnp.dot(
        jnp.dot(q * q, lam_inv_t_ref[...], preferred_element_type=jnp.float32),
        pt2_ref[...], preferred_element_type=jnp.float32)
    yvar_ref[...] = sig_var - diag_term


# ------------------------------ host-side helpers ------------------------------

def _round_up(x, m):
    return ((x + m - 1) // m) * m


def _pad2(a, rows, cols):
    a = jnp.asarray(a, jnp.float32)
    return jnp.zeros((rows, cols), jnp.float32).at[:a.shape[0], :a.shape[1]].set(a)


def se_kernel_ref(x, y, ls):
    d2 = jnp.sum((x[:, None, :] - y[None, :, :]) ** 2, axis=-1)
    return jnp.exp(-0.5 * d2 / (ls ** 2))


def kron_ref(a, b):
    return jnp.einsum('ab,cd->acbd', a, b).reshape(
        a.shape[0] * b.shape[0], a.shape[1] * b.shape[1])


def stgp_fit(train_space, train_time, st_data, *, latlong_ls, elev_ls, time_ls,
             noise_variance):
    """State built by negative_log_likelihood (eigendecompositions etc.)."""
    # TODO(synk): torch.linalg.eigh has no Pallas equivalent; kept in plain JAX.
    Ns, Nt = train_space.shape[0], train_time.shape[0]
    latlong_K = se_kernel_ref(train_space[:, 0:2], train_space[:, 0:2], latlong_ls)
    elev_K = se_kernel_ref(train_space[:, 2:3], train_space[:, 2:3], elev_ls)
    spatial_K = latlong_K * elev_K + jnp.eye(Ns, dtype=jnp.float32) * JITTER
    temporal_K = (se_kernel_ref(train_time, train_time, time_ls)
                  + jnp.eye(Nt, dtype=jnp.float32) * JITTER)
    ev_s, Vs = jnp.linalg.eigh(spatial_K)
    ev_t, Vt = jnp.linalg.eigh(temporal_K)
    lam_inv = 1.0 / (ev_t[:, None] * ev_s[None, :] + noise_variance)   # (Nt, Ns)
    A = Vt.T @ st_data.T @ Vs                                          # (Nt, Ns)
    alpha = lam_inv * A                                                # (Nt, Ns)
    return Vt, Vs, alpha, lam_inv


def stgp_forward(params, state, train_space, train_time, test_space, test_time):
    Vt, Vs, alpha, lam_inv = state
    Ns, Nt = Vs.shape[0], Vt.shape[0]
    Ms, Mt = test_space.shape[0], test_time.shape[0]
    f32 = jnp.float32

    Ns_p = _round_up(Ns, 128)
    Nt_p = _round_up(Nt, 128)
    Mt_p = _round_up(Mt, 128)
    Ms_128 = _round_up(Ms, 128)

    def _vmem_estimate(tile):
        f = 4
        resident = (Ns_p * Ns_p + 2 * Ns_p * Nt_p + 2 * Nt_p * Mt_p + 3 * Ns_p) * f
        streamed = 2 * (tile * 3 + 2 * tile * Mt_p) * f          # double-buffered I/O tiles
        temps = (6 * tile * Ns_p + 2 * tile * Nt_p + 2 * tile * Mt_p) * f
        return resident + streamed + temps

    # Largest Ms tile (multiple of 128) that fits a conservative VMEM budget
    # (budget chosen so the same tiling is safe on v7x's 64 MiB VMEM).
    tile_ms = 128
    for cand in (512, 256, 128):
        if cand <= Ms_128 and _vmem_estimate(cand) <= (40 << 20):
            tile_ms = cand
            break
    Ms_p = _round_up(Ms, tile_ms)

    # Scalar coefficients computed once on the host (no per-element divides in-kernel).
    ll = jnp.asarray(params["latlong_ls"], f32)
    el = jnp.asarray(params["elev_ls"], f32)
    tl = jnp.asarray(params["time_ls"], f32)
    coef = jnp.stack([
        -0.5 / (ll * ll),
        -0.5 / (el * el),
        -0.5 / (tl * tl),
        jnp.exp(jnp.asarray(params["log_signal_variance"], f32)),
    ])

    # Zero-padded operands. Padded rows/cols of the eigen factors are zero, so padded
    # train points / eigenmodes contribute nothing to the contractions.
    test_sp = _pad2(test_space, Ms_p, 3)
    train_sp_t = _pad2(jnp.asarray(train_space, f32).T, 3, Ns_p)
    test_t_t = _pad2(jnp.asarray(test_time, f32).T, 1, Mt_p)
    train_t = _pad2(train_time, Nt_p, 1)
    vt_t = _pad2(jnp.asarray(Vt, f32).T, Nt_p, Nt_p)
    vs_p = _pad2(Vs, Ns_p, Ns_p)
    alpha_t = _pad2(jnp.asarray(alpha, f32).T, Ns_p, Nt_p)       # (Ns_p, Nt_p)
    lam_inv_t = _pad2(jnp.asarray(lam_inv, f32).T, Ns_p, Nt_p)   # (Ns_p, Nt_p)

    vmem = pl.BlockSpec(memory_space=pltpu.MemorySpace.VMEM)
    smem = pl.BlockSpec(memory_space=pltpu.MemorySpace.SMEM)

    # Stage 1: temporal factor (T @ Vt)^T and its square, computed exactly once.
    pt, pt2 = pl.pallas_call(
        stgp_temporal_kernel,
        out_shape=(jax.ShapeDtypeStruct((Nt_p, Mt_p), f32),
                   jax.ShapeDtypeStruct((Nt_p, Mt_p), f32)),
        in_specs=[smem, vmem, vmem, vmem],
        out_specs=(vmem, vmem),
    )(coef, train_t, test_t_t, vt_t)

    # Stage 2: stream the test-space points over a 1-D parallel grid; everything else
    # is resident in VMEM via constant index_maps.
    const = lambda i: (0, 0)
    yP, yV = pl.pallas_call(
        stgp_spatial_kernel,
        out_shape=(jax.ShapeDtypeStruct((Ms_p, Mt_p), f32),
                   jax.ShapeDtypeStruct((Ms_p, Mt_p), f32)),
        grid=(Ms_p // tile_ms,),
        in_specs=[
            smem,                                              # coef (SMEM scalars)
            pl.BlockSpec((tile_ms, 3), lambda i: (i, 0)),      # test space tile (streamed)
            pl.BlockSpec((3, Ns_p), const),                    # train space^T   (resident)
            pl.BlockSpec((Ns_p, Ns_p), const),                 # Vs              (resident)
            pl.BlockSpec((Ns_p, Nt_p), const),                 # alpha^T         (resident)
            pl.BlockSpec((Ns_p, Nt_p), const),                 # lam_inv^T       (resident)
            pl.BlockSpec((Nt_p, Mt_p), const),                 # (T Vt)^T        (resident)
            pl.BlockSpec((Nt_p, Mt_p), const),                 # ((T Vt)^T)^2    (resident)
        ],
        out_specs=(pl.BlockSpec((tile_ms, Mt_p), lambda i: (i, 0)),
                   pl.BlockSpec((tile_ms, Mt_p), lambda i: (i, 0))),
        compiler_params=pltpu.CompilerParams(
            dimension_semantics=("parallel",),
            vmem_limit_bytes=int(min(max(2 * _vmem_estimate(tile_ms), 8 << 20), 48 << 20)),
        ),
    )(coef, test_sp, train_sp_t, vs_p, alpha_t, lam_inv_t, pt, pt2)

    return yP[:Ms, :Mt], yV[:Ms, :Mt]


def stgp_forward_ref(params, state, train_space, train_time, test_space, test_time):
    """Literal translation of the PyTorch forward (explicit Kronecker)."""
    Vt, Vs, alpha, lam_inv = state
    Ms, Mt = test_space.shape[0], test_time.shape[0]
    test_latlong_K = se_kernel_ref(test_space[:, 0:2], train_space[:, 0:2],
                                   params["latlong_ls"])
    test_elev_K = se_kernel_ref(test_space[:, 2:3], train_space[:, 2:3],
                                params["elev_ls"])
    test_spatial_K = test_latlong_K * test_elev_K
    test_temporal_K = se_kernel_ref(test_time, train_time, params["time_ls"])
    test_st_K = kron_ref(test_temporal_K, test_spatial_K)
    V = kron_ref(Vt, Vs)
    Lam = jnp.diag(lam_inv.reshape(-1))
    alpha_flat = alpha.reshape(-1, 1)
    yPred = test_st_K @ V @ alpha_flat
    sigma_inv = V @ Lam @ V.T
    diag_term = jnp.diag(test_st_K @ sigma_inv @ test_st_K.T)
    yVar = jnp.exp(params["log_signal_variance"]) - diag_term
    yPred = yPred.reshape(Mt, Ms).T
    yVar = yVar.reshape(Mt, Ms).T
    return yPred, yVar


if __name__ == "__main__":
    key = jax.random.PRNGKey(0)
    k1, k2, k3, k4, k5, k6, k7 = jax.random.split(key, 7)

    Ns, Nt, Ms, Mt = 8, 8, 8, 8  # train space/time, test space/time points

    params = dict(
        latlong_ls=4300.0, elev_ls=30.0, time_ls=0.25,
        log_noise_variance=jnp.log(jnp.float32(0.1)),
        log_signal_variance=jnp.log(jnp.float32(1.0)),
    )

    train_space = jnp.concatenate(
        [jax.random.uniform(k1, (Ns, 2), jnp.float32) * 5000.0,
         jax.random.uniform(k2, (Ns, 1), jnp.float32) * 100.0], axis=-1)
    train_time = jax.random.uniform(k3, (Nt, 1), jnp.float32)
    test_space = jnp.concatenate(
        [jax.random.uniform(k4, (Ms, 2), jnp.float32) * 5000.0,
         jax.random.uniform(k5, (Ms, 1), jnp.float32) * 100.0], axis=-1)
    test_time = jax.random.uniform(k6, (Mt, 1), jnp.float32)
    st_data = jax.random.normal(k7, (Ns, Nt), jnp.float32)  # (space, time)

    state = stgp_fit(train_space, train_time, st_data,
                     latlong_ls=params["latlong_ls"],
                     elev_ls=params["elev_ls"],
                     time_ls=params["time_ls"],
                     noise_variance=jnp.exp(params["log_noise_variance"]))

    yPred, yVar = stgp_forward(params, state, train_space, train_time,
                               test_space, test_time)
    jax.block_until_ready((yPred, yVar))

    yPred_ref, yVar_ref = stgp_forward_ref(params, state, train_space, train_time,
                                           test_space, test_time)
    assert yPred.shape == (Ms, Mt) and yVar.shape == (Ms, Mt)
    assert jnp.allclose(yPred, yPred_ref, atol=2e-2, rtol=2e-2)
    assert jnp.allclose(yVar, yVar_ref, atol=2e-2, rtol=2e-2)
    print("KERNEL_OK")
</pallas_src>

<mosaic_0001>
module attributes {stable_mosaic.version = 11 : i64} {
  func.func @stgp_temporal_kernel(%arg0: memref<4xf32, #tpu.memory_space<smem>>, %arg1: memref<128x1xf32, #tpu.memory_space<vmem>>, %arg2: memref<1x128xf32, #tpu.memory_space<vmem>>, %arg3: memref<128x128xf32, #tpu.memory_space<vmem>>, %arg4: memref<128x128xf32, #tpu.memory_space<vmem>>, %arg5: memref<128x128xf32, #tpu.memory_space<vmem>>) attributes {dimension_semantics = [], scalar_prefetch = 0 : i64, scratch_operands = 0 : i64, tpu.core_type = #tpu.core_type<tc>} {
    %c2 = arith.constant 2 : index
    %0 = memref.load %arg0[%c2] : memref<4xf32, #tpu.memory_space<smem>>
    %c0 = arith.constant 0 : index
    %c0_0 = arith.constant 0 : index
    %1 = vector.load %arg1[%c0, %c0_0] : memref<128x1xf32, #tpu.memory_space<vmem>>, vector<128x1xf32>
    %c0_1 = arith.constant 0 : index
    %c0_2 = arith.constant 0 : index
    %2 = vector.load %arg2[%c0_1, %c0_2] : memref<1x128xf32, #tpu.memory_space<vmem>>, vector<1x128xf32>
    %3 = vector.broadcast %1 : vector<128x1xf32> to vector<128x128xf32>
    %4 = vector.broadcast %2 : vector<1x128xf32> to vector<128x128xf32>
    %5 = arith.subf %3, %4 : vector<128x128xf32>
    %6 = arith.mulf %5, %5 : vector<128x128xf32>
    %7 = vector.broadcast %0 : f32 to vector<128x128xf32>
    %8 = arith.mulf %7, %6 : vector<128x128xf32>
    %9 = math.exp %8 : vector<128x128xf32>
    %c0_3 = arith.constant 0 : index
    %c0_4 = arith.constant 0 : index
    %10 = vector.load %arg3[%c0_3, %c0_4] : memref<128x128xf32, #tpu.memory_space<vmem>>, vector<128x128xf32>
    %cst = arith.constant dense<0.000000e+00> : vector<128x128xf32>
    %11 = tpu.matmul %10, %9, %cst {dimension_numbers = #tpu.dot_dimension_numbers<[1], [0], [0], [1], [0, 0, 1, 1], [], []>} : vector<128x128xf32>, vector<128x128xf32>, vector<128x128xf32> -> vector<128x128xf32>
    %c0_5 = arith.constant 0 : index
    %c0_6 = arith.constant 0 : index
    %12 = vector.load %arg4[%c0_5, %c0_6] : memref<128x128xf32, #tpu.memory_space<vmem>>, vector<128x128xf32>
    tpu.vector_store %arg4[%c0_5, %c0_6], %11 {strides = array<i32>} : memref<128x128xf32, #tpu.memory_space<vmem>>, vector<128x128xf32>,
    %13 = arith.mulf %11, %11 : vector<128x128xf32>
    %c0_7 = arith.constant 0 : index
    %c0_8 = arith.constant 0 : index
    %14 = vector.load %arg5[%c0_7, %c0_8] : memref<128x128xf32, #tpu.memory_space<vmem>>, vector<128x128xf32>
    tpu.vector_store %arg5[%c0_7, %c0_8], %13 {strides = array<i32>} : memref<128x128xf32, #tpu.memory_space<vmem>>, vector<128x128xf32>,
    return
  }
}

</mosaic_0001>

<bundles_post_ra>
// kernel: tpu_custom_call.1
= control target key start
LH: loop header
LB: loop body
LE: loop exit
PB: predicated region body
PF: predicated region fallthrough
CT: control target
= control target key end

     0   :  { %11 = vsyncpa [#allocation4], 0  ;;  %s861_s0 = inlined_call_operand.vmem [shape: f32[4], index: 0, kind: input, shape index: {}]   ;;  %s862_s1 = inlined_call_operand.vmem [shape: f32[128,1], index: 1, kind: input, shape index: {}]   ;;  %s863_s2 = inlined_call_operand.vmem [shape: f32[1,128], index: 2, kind: input, shape index: {}]   ;;  %s864_s3 = inlined_call_operand.vmem [shape: f32[128,128], index: 3, kind: input, shape index: {}]   ;;  %s865_s4 = inlined_call_operand.hbm [shape: f32[128,128], index: 4, kind: output, shape index: {0}]   ;;  %s866_s5 = inlined_call_operand.hbm [shape: f32[128,128], index: 5, kind: output, shape index: {1}]  }
   0x1   :  { %12 = vsyncpa [#allocation3], 0 }
   0x2   :  { %13 = vsyncpa [#allocation7], 0  ;;  %s20_s20 = sshll.u32 %s861_s0, 4  ;;  %s21_s20 = int_to_ptr.vmem [resolvable:$true] %s20_s20 }
   0x3   :  { %s623_s21 = scalar_lea.vmem %s21_s20, 16  ;;  %p628_p1 = scmp.lt.s32.totalorder %s21_s20, %s21_s20 }
   0x4   :  { %p624_p0 = scmp.ne.s32.totalorder %s21_s20, %s623_s21  ;;  %p629_p2 = scmp.lt.s32.totalorder %s623_s21, %s623_s21 }
   0x6   :  { %p630_p3 = por %p629_p2, %p628_p1 }
   0x8   :  { %p631_p4 = pnand %p630_p3, %p624_p0 }
   0xa   :  { %634 = shalt.err (!%p631_p4)
}
   0xb   :  { %s681_s22 = smov [#allocation2]  }
   0xc   :  { %23 = dma.vmem_to_smem %s21_s20, 16, %s681_s22, [#allocation4]  }
   0xd   :  { %675 = dma.done.wait [#allocation4], 16  }
   0xe   :  { %676 = vsyncadd [#allocation4], 4294967280 }
   0xf   :  { %33 = sfence }
  0x10   :  { %v50_v0 = vld [vmem:[%s862_s1 + $0x78] sm:$0xff]  ;;  %v48_v1 = vld [vmem:[%s862_s1 + $0x68] sm:$0xff]  ;;  %v682_v2 = vmov 0   ;;  %v49_v3 = vld [vmem:[%s862_s1 + $0x70] sm:$0xff]  ;;  %s461_s7 = sld [smem:[#allocation2 + $0x2]] }
  0x11   :  { %590 = vset.pattern.permute.xlu1 %v682_v2  ;;  %589 = vset.pattern.permute.xlu0 %v682_v2  ;;  %v47_v4 = vld [vmem:[%s862_s1 + $0x60] sm:$0xff]  ;;  %v46_v5 = vld [vmem:[%s862_s1 + $0x58] sm:$0xff]  ;;  %v45_v6 = vld [vmem:[%s862_s1 + $0x50] sm:$0xff] }
  0x12   :  { %129 = vperm.xlu0 %589, %v50_v0   ;;  %119 = vperm.xlu1 %590, %v48_v1   ;;  %v44_v7 = vld [vmem:[%s862_s1 + $0x48] sm:$0xff]  ;;  %v43_v8 = vld [vmem:[%s862_s1 + $0x40] sm:$0xff]  ;;  %v42_v9 = vld [vmem:[%s862_s1 + $0x38] sm:$0xff] }
  0x13   :  { %v41_v10 = vld [vmem:[%s862_s1 + $0x30] sm:$0xff]  ;;  %v40_v11 = vld [vmem:[%s862_s1 + $0x28] sm:$0xff]  ;;  %v39_v12 = vld [vmem:[%s862_s1 + $0x20] sm:$0xff] }
  0x14   :  { %v38_v13 = vld [vmem:[%s862_s1 + $0x18] sm:$0xff]  ;;  %v37_v14 = vld [vmem:[%s862_s1 + $0x10] sm:$0xff]  ;;  %v36_v15 = vld [vmem:[%s862_s1 + $0x8] sm:$0xff] }
  0x15   :  { %v35_v16 = vld [vmem:[%s862_s1] sm:$0xff] }
  0x16   :  { %124 = vperm.xlu0 %589, %v49_v3   ;;  %114 = vperm.xlu1 %590, %v47_v4   ;;  %v219_v17 = vld [vmem:[%s864_s3] sm:$0xff]  ;;  %v781_v24 = vstv %s461_s7 }
  0x17   :  { %v227_v18 = vld [vmem:[%s864_s3 + $0x40] sm:$0xff]  ;;  %527 = vmatprep.mubr.f32.mxu0 %v219_v17 }
  0x18   :  { %539 = vmatprep.mubr.f32.mxu1 %v227_v18  ;;  %v777_v19 = vld [vmem:[%s863_s2] ss:$0 sm:$0xff]  ;;  %s684_s2 = smov [#allocation6]  }
  0x19   :  { %s445_s10 = sshll.u32 %s684_s2, 4  ;;  %s446_s10 = int_to_ptr.vmem [resolvable:$true] %s445_s10 }
  0x1a   :  { %109 = vperm.xlu0 %589, %v46_v5   ;;  %104 = vperm.xlu1 %590, %v45_v6  }
  0x1e   :  { %99 = vperm.xlu0 %589, %v44_v7   ;;  %94 = vperm.xlu1 %590, %v43_v8  }
  0x22   :  { %89 = vperm.xlu0 %589, %v42_v9   ;;  %84 = vperm.xlu1 %590, %v41_v10  }
  0x26   :  { %79 = vperm.xlu0 %589, %v40_v11   ;;  %74 = vperm.xlu1 %590, %v39_v12  }
  0x2a   :  { %69 = vperm.xlu0 %589, %v38_v13   ;;  %64 = vperm.xlu1 %590, %v37_v14  }
  0x2e   :  { %59 = vperm.xlu0 %589, %v36_v15   ;;  %54 = vperm.xlu1 %590, %v35_v16  }
  0x8d   :  { %v130_v20 = vpop.permute.xlu0 %129  ;;  %v120_v21 = vpop.permute.xlu1 %119 }
  0x8e   :  { %v153_v22 = vsub.f32 %v130_v20, %v777_v19  ;;  %v151_v23 = vsub.f32 %v120_v21, %v777_v19 }
  0x90   :  { %v169_v25 = vmul.f32 %v153_v22, %v153_v22  ;;  %v167_v26 = vmul.f32 %v151_v23, %v151_v23 }
  0x91   :  { %v125_v27 = vpop.permute.xlu0 %124  ;;  %v115_v28 = vpop.permute.xlu1 %114 }
  0x92   :  { %v186_v29 = vmul.f32 %v781_v24, %v169_v25  ;;  %v152_v30 = vsub.f32 %v125_v27, %v777_v19  ;;  %v150_v31 = vsub.f32 %v115_v28, %v777_v19  ;;  %v184_v33 = vmul.f32 %v781_v24, %v167_v26 }
  0x94   :  { %v217_v32 = vmul.f32 1.442695, %v186_v29  ;;  %v168_v34 = vmul.f32 %v152_v30, %v152_v30  ;;  %v166_v35 = vmul.f32 %v150_v31, %v150_v31  ;;  %v213_v42 = vmul.f32 1.442695, %v184_v33 }
  0x95   :  { %v110_v36 = vpop.permute.xlu0 %109  ;;  %v105_v37 = vpop.permute.xlu1 %104 }
  0x96   :  { %591 = vpow2.f32 %v217_v32  ;;  %v185_v38 = vmul.f32 %v781_v24, %v168_v34  ;;  %v183_v39 = vmul.f32 %v781_v24, %v166_v35  ;;  %v149_v40 = vsub.f32 %v110_v36, %v777_v19 }
  0x97   :  { %v148_v41 = vsub.f32 %v105_v37, %v777_v19 }
  0x98   :  { %v215_v43 = vmul.f32 1.442695, %v185_v38  ;;  %v165_v44 = vmul.f32 %v149_v40, %v149_v40  ;;  %v211_v45 = vmul.f32 1.442695, %v183_v39 }
  0x99   :  { %v164_v46 = vmul.f32 %v148_v41, %v148_v41  ;;  %v100_v47 = vpop.permute.xlu0 %99  ;;  %v95_v48 = vpop.permute.xlu1 %94 }
  0x9a   :  { %593 = vpow2.f32 %v215_v43  ;;  %v182_v49 = vmul.f32 %v781_v24, %v165_v44  ;;  %v147_v50 = vsub.f32 %v100_v47, %v777_v19  ;;  %v146_v51 = vsub.f32 %v95_v48, %v777_v19 }
  0x9b   :  { %v181_v52 = vmul.f32 %v781_v24, %v164_v46  ;;  %595 = vpow2.f32 %v213_v42 }
  0x9c   :  { %v209_v53 = vmul.f32 1.442695, %v182_v49  ;;  %v163_v54 = vmul.f32 %v147_v50, %v147_v50  ;;  %v162_v55 = vmul.f32 %v146_v51, %v146_v51  ;;  %597 = vpow2.f32 %v211_v45 }
  0x9d   :  { %v207_v56 = vmul.f32 1.442695, %v181_v52  ;;  %v90_v57 = vpop.permute.xlu0 %89  ;;  %v85_v58 = vpop.permute.xlu1 %84 }
  0x9e   :  { %v180_v59 = vmul.f32 %v781_v24, %v163_v54  ;;  %v179_v60 = vmul.f32 %v781_v24, %v162_v55  ;;  %v145_v61 = vsub.f32 %v90_v57, %v777_v19  ;;  %v144_v62 = vsub.f32 %v85_v58, %v777_v19  ;;  %v228_v54 = vld [vmem:[%s864_s3 + $0x48] sm:$0xff]  ;;  %v221_v55 = vld [vmem:[%s864_s3 + $0x10] sm:$0xff]  ;;  %v222_v57 = vld [vmem:[%s864_s3 + $0x18] sm:$0xff] }
  0x9f   :  { %599 = vpow2.f32 %v209_v53  ;;  %v220_v53 = vld [vmem:[%s864_s3 + $0x8] sm:$0xff]  ;;  %v230_v58 = vld [vmem:[%s864_s3 + $0x58] sm:$0xff] }
  0xa0   :  { %v205_v63 = vmul.f32 1.442695, %v180_v59  ;;  %v161_v0 = vmul.f32 %v145_v61, %v145_v61  ;;  %601 = vpow2.f32 %v207_v56  ;;  %v160_v1 = vmul.f32 %v144_v62, %v144_v62  ;;  %v229_v56 = vld [vmem:[%s864_s3 + $0x50] sm:$0xff]  ;;  %v223_v59 = vld [vmem:[%s864_s3 + $0x20] sm:$0xff]  ;;  %v224_v61 = vld [vmem:[%s864_s3 + $0x28] sm:$0xff] }
  0xa1   :  { %v80_v2 = vpop.permute.xlu0 %79  ;;  %v75_v3 = vpop.permute.xlu1 %74  ;;  %v203_v4 = vmul.f32 1.442695, %v179_v60  ;;  %v231_v60 = vld [vmem:[%s864_s3 + $0x60] sm:$0xff]  ;;  %v232_v62 = vld [vmem:[%s864_s3 + $0x68] sm:$0xff] }
  0xa2   :  { %v178_v5 = vmul.f32 %v781_v24, %v161_v0  ;;  %v143_v6 = vsub.f32 %v80_v2, %v777_v19  ;;  %v142_v7 = vsub.f32 %v75_v3, %v777_v19  ;;  %v177_v9 = vmul.f32 %v781_v24, %v160_v1  ;;  %v233_v0 = vld [vmem:[%s864_s3 + $0x70] sm:$0xff]  ;;  %v226_v1 = vld [vmem:[%s864_s3 + $0x38] sm:$0xff] }
  0xa3   :  { %v592_v8 = vpop.eup %591  ;;  %603 = vpow2.f32 %v205_v63  ;;  %v225_v63 = vld [vmem:[%s864_s3 + $0x30] sm:$0xff]  ;;  %v234_v2 = vld [vmem:[%s864_s3 + $0x78] sm:$0xff]  ;;  %s683_s3 = smov [#allocation5]  }
  0xa4   :  { %v201_v10 = vmul.f32 1.442695, %v178_v5  ;;  %v159_v11 = vmul.f32 %v143_v6, %v143_v6  ;;  %v158_v12 = vmul.f32 %v142_v7, %v142_v7  ;;  %495 = vmatprep.subr.mxu0 %v592_v8  ;;  %551 = vmatprep.subr.mxu1 %v592_v8  ;;  %v199_v13 = vmul.f32 1.442695, %v177_v9  ;;  %s433_s1 = sshll.u32 %s683_s3, 4  ;;  %s434_s1 = int_to_ptr.vmem [resolvable:$true] %s433_s1 }
  0xa5   :  { %v70_v14 = vpop.permute.xlu0 %69  ;;  %v65_v15 = vpop.permute.xlu1 %64  ;;  %496 = vmatpush3.msra.mxu0 %v592_v8  ;;  %567 = vmatpush3.msra.mxu1 %v592_v8  ;;  %605 = vpow2.f32 %v203_v4  ;;  %s635_s11 = scalar_lea.vmem %s434_s1, 2048  ;;  %p640_p6 = scmp.lt.s32.totalorder %s434_s1, %s434_s1 }
  0xa6   :  { %v176_v16 = vmul.f32 %v781_v24, %v159_v11  ;;  %v175_v17 = vmul.f32 %v781_v24, %v158_v12  ;;  %v141_v18 = vsub.f32 %v70_v14, %v777_v19  ;;  %v140_v21 = vsub.f32 %v65_v15, %v777_v19  ;;  %p636_p5 = scmp.ne.s32.totalorder %s434_s1, %s635_s11  ;;  %p641_p7 = scmp.lt.s32.totalorder %s635_s11, %s635_s11 }
  0xa7   :  { %v594_v20 = vpop.eup %593  ;;  %607 = vpow2.f32 %v201_v10 }
  0xa8   :  { %v197_v22 = vmul.f32 1.442695, %v176_v16  ;;  %v157_v23 = vmul.f32 %v141_v18, %v141_v18  ;;  %497 = vmatprep.subr.mxu0 %v594_v20  ;;  %552 = vmatprep.subr.mxu1 %v594_v20  ;;  %v596_v25 = vpop.eup %595  ;;  %609 = vpow2.f32 %v199_v13  ;;  %v156_v26 = vmul.f32 %v140_v21, %v140_v21  ;;  %p642_p8 = por %p641_p7, %p640_p6 }
  0xa9   :  { %v60_v27 = vpop.permute.xlu0 %59  ;;  %v55_v28 = vpop.permute.xlu1 %54  ;;  %498 = vmatpush3.msra.mxu0 %v594_v20  ;;  %568 = vmatpush3.msra.mxu1 %v594_v20  ;;  %v195_v29 = vmul.f32 1.442695, %v175_v17 }
  0xaa   :  { %v174_v30 = vmul.f32 %v781_v24, %v157_v23  ;;  %v139_v31 = vsub.f32 %v60_v27, %v777_v19  ;;  %v138_v32 = vsub.f32 %v55_v28, %v777_v19  ;;  %499 = vmatprep.subr.mxu0 %v596_v25  ;;  %553 = vmatprep.subr.mxu1 %v596_v25  ;;  %v598_v33 = vpop.eup %597  ;;  %611 = vpow2.f32 %v197_v22  ;;  %p643_p9 = pnand %p642_p8, %p636_p5 }
  0xab   :  { %v173_v34 = vmul.f32 %v781_v24, %v156_v26  ;;  %500 = vmatpush3.msra.mxu0 %v596_v25  ;;  %569 = vmatpush3.msra.mxu1 %v596_v25  ;;  %613 = vpow2.f32 %v195_v29 }
  0xac   :  { %v193_v35 = vmul.f32 1.442695, %v174_v30  ;;  %v155_v36 = vmul.f32 %v139_v31, %v139_v31  ;;  %v154_v37 = vmul.f32 %v138_v32, %v138_v32  ;;  %501 = vmatprep.subr.mxu0 %v598_v33  ;;  %554 = vmatprep.subr.mxu1 %v598_v33  ;;  %v600_v38 = vpop.eup %599 }
  0xad   :  { %502 = vmatpush3.msra.mxu0 %v598_v33  ;;  %570 = vmatpush3.msra.mxu1 %v598_v33  ;;  %v602_v39 = vpop.eup %601  ;;  %v191_v40 = vmul.f32 1.442695, %v173_v34 }
  0xae   :  { %v172_v19 = vmul.f32 %v781_v24, %v155_v36  ;;  %v171_v41 = vmul.f32 %v781_v24, %v154_v37  ;;  %503 = vmatprep.subr.mxu0 %v600_v38  ;;  %555 = vmatprep.subr.mxu1 %v600_v38  ;;  %615 = vpow2.f32 %v193_v35 }
  0xaf   :  { %504 = vmatpush3.msra.mxu0 %v600_v38  ;;  %571 = vmatpush3.msra.mxu1 %v600_v38  ;;  %617 = vpow2.f32 %v191_v40 }
  0xb0   :  { %v189_v42 = vmul.f32 1.442695, %v172_v19  ;;  %505 = vmatprep.subr.mxu0 %v602_v39  ;;  %556 = vmatprep.subr.mxu1 %v602_v39  ;;  %v604_v43 = vpop.eup %603  ;;  %v187_v44 = vmul.f32 1.442695, %v171_v41 }
  0xb1   :  { %506 = vmatpush3.msra.mxu0 %v602_v39  ;;  %572 = vmatpush3.msra.mxu1 %v602_v39 }
  0xb2   :  { %507 = vmatprep.subr.mxu0 %v604_v43  ;;  %557 = vmatprep.subr.mxu1 %v604_v43  ;;  %v606_v45 = vpop.eup %605  ;;  %619 = vpow2.f32 %v189_v42 }
  0xb3   :  { %508 = vmatpush3.msra.mxu0 %v604_v43  ;;  %573 = vmatpush3.msra.mxu1 %v604_v43  ;;  %621 = vpow2.f32 %v187_v44 }
  0xb4   :  { %509 = vmatprep.subr.mxu0 %v606_v45  ;;  %558 = vmatprep.subr.mxu1 %v606_v45  ;;  %v608_v24 = vpop.eup %607 }
  0xb5   :  { %510 = vmatpush3.msra.mxu0 %v606_v45  ;;  %574 = vmatpush3.msra.mxu1 %v606_v45  ;;  %v610_v46 = vpop.eup %609 }
  0xb6   :  { %511 = vmatprep.subr.mxu0 %v608_v24  ;;  %559 = vmatprep.subr.mxu1 %v608_v24 }
  0xb7   :  { %512 = vmatpush3.msra.mxu0 %v608_v24  ;;  %575 = vmatpush3.msra.mxu1 %v608_v24  ;;  %v612_v47 = vpop.eup %611 }
  0xb8   :  { %513 = vmatprep.subr.mxu0 %v610_v46  ;;  %560 = vmatprep.subr.mxu1 %v610_v46  ;;  %v614_v48 = vpop.eup %613 }
  0xb9   :  { %514 = vmatpush3.msra.mxu0 %v610_v46  ;;  %576 = vmatpush3.msra.mxu1 %v610_v46 }
  0xba   :  { %515 = vmatprep.subr.mxu0 %v612_v47  ;;  %561 = vmatprep.subr.mxu1 %v612_v47 }
  0xbb   :  { %516 = vmatpush3.msra.mxu0 %v612_v47  ;;  %577 = vmatpush3.msra.mxu1 %v612_v47  ;;  %v616_v49 = vpop.eup %615 }
  0xbc   :  { %517 = vmatprep.subr.mxu0 %v614_v48  ;;  %562 = vmatprep.subr.mxu1 %v614_v48  ;;  %v618_v50 = vpop.eup %617 }
  0xbd   :  { %518 = vmatpush3.msra.mxu0 %v614_v48  ;;  %578 = vmatpush3.msra.mxu1 %v614_v48 }
  0xbe   :  { %519 = vmatprep.subr.mxu0 %v616_v49  ;;  %563 = vmatprep.subr.mxu1 %v616_v49 }
  0xbf   :  { %520 = vmatpush3.msra.mxu0 %v616_v49  ;;  %579 = vmatpush3.msra.mxu1 %v616_v49  ;;  %v620_v51 = vpop.eup %619 }
  0xc0   :  { %521 = vmatprep.subr.mxu0 %v618_v50  ;;  %564 = vmatprep.subr.mxu1 %v618_v50  ;;  %v622_v52 = vpop.eup %621 }
  0xc1   :  { %522 = vmatpush3.msra.mxu0 %v618_v50  ;;  %580 = vmatpush3.msra.mxu1 %v618_v50 }
  0xc2   :  { %523 = vmatprep.subr.mxu0 %v620_v51  ;;  %565 = vmatprep.subr.mxu1 %v620_v51 }
  0xc3   :  { %524 = vmatpush3.msra.mxu0 %v620_v51  ;;  %581 = vmatpush3.msra.mxu1 %v620_v51 }
  0xc4   :  { %525 = vmatprep.subr.mxu0 %v622_v52  ;;  %566 = vmatprep.subr.mxu1 %v622_v52 }
  0xc5   :  { %526 = vmatpush3.msra.mxu0 %v622_v52  ;;  %582 = vmatpush3.msra.mxu1 %v622_v52 }
  0xc6   :  { %528 = vmatmul.mubr.f32.vlgmr.msra.gmra.mxu0 %v220_v53  ;;  %540 = vmatmul.mubr.f32.vlgmr.msra.gmra.mxu1 %v228_v54 }
  0xc7   :  { %530 = vmatprep.mubr.f32.mxu0 %v221_v55  ;;  %542 = vmatprep.mubr.f32.mxu1 %v229_v56 }
  0xca   :  { %531 = vmatmul.mubr.f32.gmra.mxu0 %v222_v57  ;;  %543 = vmatmul.mubr.f32.gmra.mxu1 %v230_v58 }
  0xcb   :  { %533 = vmatprep.mubr.f32.mxu0 %v223_v59  ;;  %545 = vmatprep.mubr.f32.mxu1 %v231_v60 }
  0xce   :  { %534 = vmatmul.mubr.f32.gmra.mxu0 %v224_v61  ;;  %546 = vmatmul.mubr.f32.gmra.mxu1 %v232_v62 }
  0xcf   :  { %536 = vmatprep.mubr.f32.mxu0 %v225_v63  ;;  %548 = vmatprep.mubr.f32.mxu1 %v233_v0 }
  0xd2   :  { %537 = vmatmul.mubr.f32.gmra.mxu0 %v226_v1  ;;  %549 = vmatmul.mubr.f32.gmra.mxu1 %v234_v2 }
 0x186   :  { %v529_v3 = vpop.f32.mrf.mxu0  ;;  %v541_v4 = vpop.f32.mrf.mxu1 }
 0x187   :  { %381 = vst [vmem:[#allocation5 + $0x8] sm:$0xff] %v529_v3  ;;  %v397_v5 = vmul.f32 %v529_v3, %v529_v3  ;;  %389 = vst [vmem:[#allocation5 + $0x48] sm:$0xff] %v541_v4  ;;  %v405_v6 = vmul.f32 %v541_v4, %v541_v4 }
 0x188   :  { %v301_v7 = vpop.f32.mrf.mxu0  ;;  %v341_v8 = vpop.f32.mrf.mxu1 }
 0x189   :  { %413 = vst [vmem:[#allocation6 + $0x8] sm:$0xff] %v397_v5  ;;  %421 = vst [vmem:[#allocation6 + $0x48] sm:$0xff] %v405_v6  ;;  %v396_v9 = vmul.f32 %v301_v7, %v301_v7  ;;  %v404_v10 = vmul.f32 %v341_v8, %v341_v8 }
 0x18a   :  { %380 = vst [vmem:[#allocation5] sm:$0xff] %v301_v7  ;;  %388 = vst [vmem:[#allocation5 + $0x40] sm:$0xff] %v341_v8  ;;  %v532_v11 = vpop.f32.mrf.mxu0  ;;  %v544_v12 = vpop.f32.mrf.mxu1 }
 0x18b   :  { %412 = vst [vmem:[#allocation6] sm:$0xff] %v396_v9  ;;  %420 = vst [vmem:[#allocation6 + $0x40] sm:$0xff] %v404_v10  ;;  %v399_v13 = vmul.f32 %v532_v11, %v532_v11  ;;  %v407_v14 = vmul.f32 %v544_v12, %v544_v12 }
 0x18c   :  { %383 = vst [vmem:[#allocation5 + $0x18] sm:$0xff] %v532_v11  ;;  %391 = vst [vmem:[#allocation5 + $0x58] sm:$0xff] %v544_v12  ;;  %v311_v15 = vpop.f32.mrf.mxu0  ;;  %v351_v16 = vpop.f32.mrf.mxu1 }
 0x18d   :  { %415 = vst [vmem:[#allocation6 + $0x18] sm:$0xff] %v399_v13  ;;  %423 = vst [vmem:[#allocation6 + $0x58] sm:$0xff] %v407_v14  ;;  %v398_v17 = vmul.f32 %v311_v15, %v311_v15  ;;  %v406_v18 = vmul.f32 %v351_v16, %v351_v16 }
 0x18e   :  { %382 = vst [vmem:[#allocation5 + $0x10] sm:$0xff] %v311_v15  ;;  %390 = vst [vmem:[#allocation5 + $0x50] sm:$0xff] %v351_v16  ;;  %v535_v20 = vpop.f32.mrf.mxu0  ;;  %v547_v21 = vpop.f32.mrf.mxu1 }
 0x18f   :  { %414 = vst [vmem:[#allocation6 + $0x10] sm:$0xff] %v398_v17  ;;  %422 = vst [vmem:[#allocation6 + $0x50] sm:$0xff] %v406_v18  ;;  %v401_v22 = vmul.f32 %v535_v20, %v535_v20  ;;  %v409_v23 = vmul.f32 %v547_v21, %v547_v21 }
 0x190   :  { %385 = vst [vmem:[#allocation5 + $0x28] sm:$0xff] %v535_v20  ;;  %393 = vst [vmem:[#allocation5 + $0x68] sm:$0xff] %v547_v21  ;;  %v321_v25 = vpop.f32.mrf.mxu0  ;;  %v361_v26 = vpop.f32.mrf.mxu1 }
 0x191   :  { %417 = vst [vmem:[#allocation6 + $0x28] sm:$0xff] %v401_v22  ;;  %425 = vst [vmem:[#allocation6 + $0x68] sm:$0xff] %v409_v23  ;;  %v400_v27 = vmul.f32 %v321_v25, %v321_v25  ;;  %v408_v28 = vmul.f32 %v361_v26, %v361_v26 }
 0x192   :  { %384 = vst [vmem:[#allocation5 + $0x20] sm:$0xff] %v321_v25  ;;  %392 = vst [vmem:[#allocation5 + $0x60] sm:$0xff] %v361_v26  ;;  %v538_v29 = vpop.f32.mrf.mxu0  ;;  %v550_v30 = vpop.f32.mrf.mxu1 }
 0x193   :  { %416 = vst [vmem:[#allocation6 + $0x20] sm:$0xff] %v400_v27  ;;  %424 = vst [vmem:[#allocation6 + $0x60] sm:$0xff] %v408_v28  ;;  %v403_v31 = vmul.f32 %v538_v29, %v538_v29  ;;  %v411_v32 = vmul.f32 %v550_v30, %v550_v30 }
 0x194   :  { %387 = vst [vmem:[#allocation5 + $0x38] sm:$0xff] %v538_v29  ;;  %395 = vst [vmem:[#allocation5 + $0x78] sm:$0xff] %v550_v30  ;;  %v331_v33 = vpop.f32.mrf.mxu0  ;;  %v371_v34 = vpop.f32.mrf.mxu1 }
 0x195   :  { %419 = vst [vmem:[#allocation6 + $0x38] sm:$0xff] %v403_v31  ;;  %427 = vst [vmem:[#allocation6 + $0x78] sm:$0xff] %v411_v32  ;;  %v402_v35 = vmul.f32 %v331_v33, %v331_v33  ;;  %v410_v36 = vmul.f32 %v371_v34, %v371_v34 }
 0x196   :  { %386 = vst [vmem:[#allocation5 + $0x30] sm:$0xff] %v331_v33  ;;  %394 = vst [vmem:[#allocation5 + $0x70] sm:$0xff] %v371_v34 }
 0x197   :  { %646 = shalt.err (!%p643_p9)
}
 0x198   :  { %s685_s12 = smov 128   ;;  %s686_s13 = smov 8   ;;  %418 = vst [vmem:[#allocation6 + $0x30] sm:$0xff] %v402_v35  ;;  %426 = vst [vmem:[#allocation6 + $0x70] sm:$0xff] %v410_v36 }
 0x199   :  { %439 = dma.vmem_to_hbm [thread:$0]  %s434_s1, 2048, %s865_s4, [#allocation3], %s685_s12, %s685_s12, %s686_s13  }
 0x19a   :  { %s655_s16 = scalar_lea.vmem %s446_s10, 2048  ;;  %p660_p11 = scmp.lt.s32.totalorder %s446_s10, %s446_s10 }
 0x19b   :  { %p656_p10 = scmp.ne.s32.totalorder %s446_s10, %s655_s16  ;;  %p661_p12 = scmp.lt.s32.totalorder %s655_s16, %s655_s16 }
 0x19d   :  { %p662_p13 = por %p661_p12, %p660_p11 }
 0x19f   :  { %p663_p0 = pnand %p662_p13, %p656_p10 }
 0x1a1   :  { %666 = shalt.err (!%p663_p0)
}
 0x1a2   :  { %451 = dma.vmem_to_hbm [thread:$0]  %s446_s10, 2048, %s866_s5, [#allocation7], %s685_s12, %s685_s12, %s686_s13  }
 0x1a3   :  { %677 = dma.done.wait [#allocation3], 2048  }
 0x1a4   :  { %678 = vsyncadd [#allocation3], 4294965248 }
 0x1a5   :  { %679 = dma.done.wait [#allocation7], 2048  }
 0x1a6   :  { %680 = vsyncadd [#allocation7], 4294965248 }
 0x1a7   :  { %458 = vsyncpa [#allocation3], 1 }
 0x1a8   :  { %459 = vsyncpa [#allocation7], 1 }
 0x1a9   :  { %460 = vsyncpa [#allocation4], 1 }

</bundles_post_ra>
